<compile_context>
chip_gen: v6e
topology: v6e:2x2x1
jax: 0.10.0
libtpu: 0.0.40
codegen_flags: <defaults>
</compile_context>

<pallas_src>
import math

import jax
import jax.numpy as jnp
from jax.experimental import pallas as pl
from jax.experimental.pallas import tpu as pltpu

_D_IN, _D_H, _D_OUT = 3, 10, 3
# Packed-parameter layout: each layer starts on an 8-aligned row; the bias sits
# in column d_in of its layer's rows.
_R1, _R2, _R3 = 0, 16, 32
_P_SHAPE = (40, 16)


def _round_up(n, m):
    return ((n + m - 1) // m) * m


def _pack_params(p):
    """Pack w1,b1,w2,b2,w3,b3 into a single (40, 16) f32 array.

    rows  0:10  -> W1 [out,in] in cols 0:3,  b1 in col 3
    rows 16:26  -> W2 [out,in] in cols 0:10, b2 in col 10
    rows 32:35  -> W3 [out,in] in cols 0:10, b3 in col 10
    """
    P = jnp.zeros(_P_SHAPE, jnp.float32)
    P = P.at[_R1:_R1 + _D_H, 0:_D_IN].set(p["w1"].astype(jnp.float32))
    P = P.at[_R1:_R1 + _D_H, _D_IN].set(p["b1"].astype(jnp.float32))
    P = P.at[_R2:_R2 + _D_H, 0:_D_H].set(p["w2"].astype(jnp.float32))
    P = P.at[_R2:_R2 + _D_H, _D_H].set(p["b2"].astype(jnp.float32))
    P = P.at[_R3:_R3 + _D_OUT, 0:_D_H].set(p["w3"].astype(jnp.float32))
    P = P.at[_R3:_R3 + _D_OUT, _D_H].set(p["b3"].astype(jnp.float32))
    return P


def mlp_kernel(p_ref, x_ref, o_ref):
    """Fused 3-layer MLP on one batch tile.

    p_ref: (40, 16) packed params (same block every step -> VMEM resident).
    x_ref: (3, bt)  activations, batch on the lane axis.
    o_ref: (3, bt)  output, batch on the lane axis (lane-dense stores).
    """
    x = x_ref[...]                                        # (3, bt) f32
    bt = x.shape[-1]

    def dense(row0, d_out, d_in, h, relu):
        # bias column -> lane-broadcast across the batch tile
        b = p_ref[row0:row0 + d_out, d_in:d_in + 1]       # (d_out, 1)
        acc = jnp.broadcast_to(b, (d_out, bt))
        # Unrolled outer-product accumulate over <= 10 contraction terms.
        # Static Python loop -> fully unrolled VPU mul/add chain.
        for k in range(d_in):
            w_col = p_ref[row0:row0 + d_out, k:k + 1]     # (d_out, 1) lane-bcast
            acc = acc + w_col * h[k:k + 1, :]             # (1, bt)    sublane-bcast
        return jnp.maximum(acc, 0.0) if relu else acc

    h1 = dense(_R1, _D_H, _D_IN, x, True)                 # (10, bt)
    h2 = dense(_R2, _D_H, _D_H, h1, True)                 # (10, bt)
    o_ref[...] = dense(_R3, _D_OUT, _D_H, h2, False).astype(o_ref.dtype)


def net_forward(x, params, *, batch_tile=None, interpret=False):
    """Forward pass. x: [B, 3] float32 -> [B, 3] float32."""
    B, d_in = x.shape
    assert d_in == _D_IN

    # ---- choose a lane-aligned batch tile: big tiles amortise per-step
    # pipeline overhead, but keep >= 2 grid steps when the batch allows it
    # (lets v7x's two TensorCores split the "parallel" axis).
    if batch_tile is None:
        if B <= 256:
            batch_tile = 128
        else:
            batch_tile = min(2048, _round_up(B, 256) // 2)
    assert batch_tile % 128 == 0, "batch_tile must be a multiple of 128 (lane width)"

    b_pad = _round_up(B, batch_tile)
    grid = (b_pad // batch_tile,)

    # ---- [B, 3] -> [3, b_pad]: batch on the lane axis; padded columns are
    # computed (cheap) and sliced away at the end, so ragged B is supported.
    x_t = jnp.zeros((_D_IN, b_pad), jnp.float32).at[:, :B].set(
        x.T.astype(jnp.float32))

    p_packed = _pack_params(params)                       # (40, 16) input window

    out_t = pl.pallas_call(
        mlp_kernel,
        out_shape=jax.ShapeDtypeStruct((_D_OUT, b_pad), jnp.float32),
        grid=grid,
        in_specs=[
            # packed params: constant block index -> loaded once, stays resident
            pl.BlockSpec(_P_SHAPE, lambda i: (0, 0)),
            # activations: batch tiled along the lane axis (dense vregs)
            pl.BlockSpec((_D_IN, batch_tile), lambda i: (0, i)),
        ],
        out_specs=pl.BlockSpec((_D_OUT, batch_tile), lambda i: (0, i)),
        compiler_params=pltpu.CompilerParams(
            dimension_semantics=("parallel",)),
        interpret=interpret,
    )(p_packed, x_t)

    # TODO(synk): optional bf16 HBM I/O on v6e/v7x (keeping f32 compute) would
    # halve memory traffic; kept f32 end-to-end for exact parity with PyTorch.
    return out_t[:, :B].T                                 # back to [B, 3]


def init_params(key):
    """Deterministic init mirroring the PyTorch module (weights stored [out, in]).

    hid1: Linear(3, 10)  xavier_uniform weight, default-uniform bias
    hid2: Linear(10, 10) xavier_uniform weight, default-uniform bias
    oupt: Linear(10, 3)  default init
    """
    ks = jax.random.split(key, 6)

    def xavier(k, fan_out, fan_in):
        bound = math.sqrt(6.0 / (fan_in + fan_out))
        return jax.random.uniform(k, (fan_out, fan_in), jnp.float32, -bound, bound)

    def default_w(k, fan_out, fan_in):
        bound = 1.0 / math.sqrt(fan_in)
        return jax.random.uniform(k, (fan_out, fan_in), jnp.float32, -bound, bound)

    def bias(k, fan_in, fan_out):
        bound = 1.0 / math.sqrt(fan_in)
        return jax.random.uniform(k, (fan_out,), jnp.float32, -bound, bound)

    return {
        "w1": xavier(ks[0], _D_H, _D_IN),     "b1": bias(ks[1], _D_IN, _D_H),
        "w2": xavier(ks[2], _D_H, _D_H),      "b2": bias(ks[3], _D_H, _D_H),
        "w3": default_w(ks[4], _D_OUT, _D_H), "b3": bias(ks[5], _D_H, _D_OUT),
    }


def net_forward_ref(x, p):
    """Pure-JAX reference for correctness checks."""
    z = jnp.maximum(x @ p["w1"].T + p["b1"], 0.0)
    z = jnp.maximum(z @ p["w2"].T + p["b2"], 0.0)
    return z @ p["w3"].T + p["b3"]


if __name__ == "__main__":
    key = jax.random.PRNGKey(0)
    k_param, k_x1, k_x2 = jax.random.split(key, 3)
    params = init_params(k_param)

    # Small batch: single 128-lane tile (16 rows padded to 128).
    x_small = jax.random.normal(k_x1, (16, 3), jnp.float32)
    out_small = jax.block_until_ready(net_forward(x_small, params))
    assert out_small.shape == (16, 3)
    assert jnp.allclose(out_small, net_forward_ref(x_small, params),
                        atol=1e-5, rtol=1e-5)

    # Ragged batch: exercises padding + a 2-step "parallel" grid (dual-TC path).
    x_big = jax.random.normal(k_x2, (300, 3), jnp.float32)
    out_big = jax.block_until_ready(net_forward(x_big, params))
    assert out_big.shape == (300, 3)
    assert jnp.allclose(out_big, net_forward_ref(x_big, params),
                        atol=1e-5, rtol=1e-5)

    print("KERNEL_OK")
</pallas_src>

<mosaic_0001>
module attributes {stable_mosaic.version = 11 : i64} {
  func.func @mlp_kernel(%arg0: i32, %arg1: memref<40x16xf32, #tpu.memory_space<vmem>>, %arg2: memref<3x128xf32, #tpu.memory_space<vmem>>, %arg3: memref<3x128xf32, #tpu.memory_space<vmem>>) attributes {dimension_semantics = [#tpu.dimension_semantics<parallel>], iteration_bounds = array<i64: 1>, scalar_prefetch = 0 : i64, scratch_operands = 0 : i64, tpu.core_type = #tpu.core_type<tc>, window_params = [{pipeline_mode = #tpu.pipeline_mode<synchronous>, transform_indices = @transform_0, window_bounds = array<i64: 40, 16>}, {transform_indices = @transform_1, window_bounds = array<i64: 3, 128>}, {transform_indices = @transform_2, window_bounds = array<i64: 3, 128>}]} {
    %c0 = arith.constant 0 : index
    %c0_0 = arith.constant 0 : index
    %0 = vector.load %arg2[%c0, %c0_0] : memref<3x128xf32, #tpu.memory_space<vmem>>, vector<3x128xf32>
    %c0_1 = arith.constant 0 : index
    %c3 = arith.constant 3 : index
    %1 = vector.load %arg1[%c0_1, %c3] : memref<40x16xf32, #tpu.memory_space<vmem>>, vector<10x1xf32>
    %2 = vector.shape_cast %1 : vector<10x1xf32> to vector<10x1xf32>
    %3 = vector.broadcast %2 : vector<10x1xf32> to vector<10x128xf32>
    %c0_2 = arith.constant 0 : index
    %c0_3 = arith.constant 0 : index
    %4 = vector.load %arg1[%c0_2, %c0_3] : memref<40x16xf32, #tpu.memory_space<vmem>>, vector<10x1xf32>
    %5 = vector.extract_strided_slice %0 {offsets = [0, 0], sizes = [1, 128], strides = [1, 1]} : vector<3x128xf32> to vector<1x128xf32>
    %6 = vector.broadcast %4 : vector<10x1xf32> to vector<10x128xf32>
    %7 = vector.broadcast %5 : vector<1x128xf32> to vector<10x128xf32>
    %8 = arith.mulf %6, %7 : vector<10x128xf32>
    %9 = arith.addf %3, %8 : vector<10x128xf32>
    %c0_4 = arith.constant 0 : index
    %c1 = arith.constant 1 : index
    %10 = vector.load %arg1[%c0_4, %c1] : memref<40x16xf32, #tpu.memory_space<vmem>>, vector<10x1xf32>
    %11 = vector.extract_strided_slice %0 {offsets = [1, 0], sizes = [1, 128], strides = [1, 1]} : vector<3x128xf32> to vector<1x128xf32>
    %12 = vector.broadcast %10 : vector<10x1xf32> to vector<10x128xf32>
    %13 = vector.broadcast %11 : vector<1x128xf32> to vector<10x128xf32>
    %14 = arith.mulf %12, %13 : vector<10x128xf32>
    %15 = arith.addf %9, %14 : vector<10x128xf32>
    %c0_5 = arith.constant 0 : index
    %c2 = arith.constant 2 : index
    %16 = vector.load %arg1[%c0_5, %c2] : memref<40x16xf32, #tpu.memory_space<vmem>>, vector<10x1xf32>
    %17 = vector.extract_strided_slice %0 {offsets = [2, 0], sizes = [1, 128], strides = [1, 1]} : vector<3x128xf32> to vector<1x128xf32>
    %18 = vector.broadcast %16 : vector<10x1xf32> to vector<10x128xf32>
    %19 = vector.broadcast %17 : vector<1x128xf32> to vector<10x128xf32>
    %20 = arith.mulf %18, %19 : vector<10x128xf32>
    %21 = arith.addf %15, %20 : vector<10x128xf32>
    %cst = arith.constant 0.000000e+00 : f32
    %22 = vector.broadcast %cst : f32 to vector<10x128xf32>
    %23 = arith.maximumf %21, %22 : vector<10x128xf32>
    %c16 = arith.constant 16 : index
    %c10 = arith.constant 10 : index
    %24 = vector.load %arg1[%c16, %c10] : memref<40x16xf32, #tpu.memory_space<vmem>>, vector<10x1xf32>
    %25 = vector.shape_cast %24 : vector<10x1xf32> to vector<10x1xf32>
    %26 = vector.broadcast %25 : vector<10x1xf32> to vector<10x128xf32>
    %c16_6 = arith.constant 16 : index
    %c0_7 = arith.constant 0 : index
    %27 = vector.load %arg1[%c16_6, %c0_7] : memref<40x16xf32, #tpu.memory_space<vmem>>, vector<10x1xf32>
    %28 = vector.extract_strided_slice %23 {offsets = [0, 0], sizes = [1, 128], strides = [1, 1]} : vector<10x128xf32> to vector<1x128xf32>
    %29 = vector.broadcast %27 : vector<10x1xf32> to vector<10x128xf32>
    %30 = vector.broadcast %28 : vector<1x128xf32> to vector<10x128xf32>
    %31 = arith.mulf %29, %30 : vector<10x128xf32>
    %32 = arith.addf %26, %31 : vector<10x128xf32>
    %c16_8 = arith.constant 16 : index
    %c1_9 = arith.constant 1 : index
    %33 = vector.load %arg1[%c16_8, %c1_9] : memref<40x16xf32, #tpu.memory_space<vmem>>, vector<10x1xf32>
    %34 = vector.extract_strided_slice %23 {offsets = [1, 0], sizes = [1, 128], strides = [1, 1]} : vector<10x128xf32> to vector<1x128xf32>
    %35 = vector.broadcast %33 : vector<10x1xf32> to vector<10x128xf32>
    %36 = vector.broadcast %34 : vector<1x128xf32> to vector<10x128xf32>
    %37 = arith.mulf %35, %36 : vector<10x128xf32>
    %38 = arith.addf %32, %37 : vector<10x128xf32>
    %c16_10 = arith.constant 16 : index
    %c2_11 = arith.constant 2 : index
    %39 = vector.load %arg1[%c16_10, %c2_11] : memref<40x16xf32, #tpu.memory_space<vmem>>, vector<10x1xf32>
    %40 = vector.extract_strided_slice %23 {offsets = [2, 0], sizes = [1, 128], strides = [1, 1]} : vector<10x128xf32> to vector<1x128xf32>
    %41 = vector.broadcast %39 : vector<10x1xf32> to vector<10x128xf32>
    %42 = vector.broadcast %40 : vector<1x128xf32> to vector<10x128xf32>
    %43 = arith.mulf %41, %42 : vector<10x128xf32>
    %44 = arith.addf %38, %43 : vector<10x128xf32>
    %c16_12 = arith.constant 16 : index
    %c3_13 = arith.constant 3 : index
    %45 = vector.load %arg1[%c16_12, %c3_13] : memref<40x16xf32, #tpu.memory_space<vmem>>, vector<10x1xf32>
    %46 = vector.extract_strided_slice %23 {offsets = [3, 0], sizes = [1, 128], strides = [1, 1]} : vector<10x128xf32> to vector<1x128xf32>
    %47 = vector.broadcast %45 : vector<10x1xf32> to vector<10x128xf32>
    %48 = vector.broadcast %46 : vector<1x128xf32> to vector<10x128xf32>
    %49 = arith.mulf %47, %48 : vector<10x128xf32>
    %50 = arith.addf %44, %49 : vector<10x128xf32>
    %c16_14 = arith.constant 16 : index
    %c4 = arith.constant 4 : index
    %51 = vector.load %arg1[%c16_14, %c4] : memref<40x16xf32, #tpu.memory_space<vmem>>, vector<10x1xf32>
    %52 = vector.extract_strided_slice %23 {offsets = [4, 0], sizes = [1, 128], strides = [1, 1]} : vector<10x128xf32> to vector<1x128xf32>
    %53 = vector.broadcast %51 : vector<10x1xf32> to vector<10x128xf32>
    %54 = vector.broadcast %52 : vector<1x128xf32> to vector<10x128xf32>
    %55 = arith.mulf %53, %54 : vector<10x128xf32>
    %56 = arith.addf %50, %55 : vector<10x128xf32>
    %c16_15 = arith.constant 16 : index
    %c5 = arith.constant 5 : index
    %57 = vector.load %arg1[%c16_15, %c5] : memref<40x16xf32, #tpu.memory_space<vmem>>, vector<10x1xf32>
    %58 = vector.extract_strided_slice %23 {offsets = [5, 0], sizes = [1, 128], strides = [1, 1]} : vector<10x128xf32> to vector<1x128xf32>
    %59 = vector.broadcast %57 : vector<10x1xf32> to vector<10x128xf32>
    %60 = vector.broadcast %58 : vector<1x128xf32> to vector<10x128xf32>
    %61 = arith.mulf %59, %60 : vector<10x128xf32>
    %62 = arith.addf %56, %61 : vector<10x128xf32>
    %c16_16 = arith.constant 16 : index
    %c6 = arith.constant 6 : index
    %63 = vector.load %arg1[%c16_16, %c6] : memref<40x16xf32, #tpu.memory_space<vmem>>, vector<10x1xf32>
    %64 = vector.extract_strided_slice %23 {offsets = [6, 0], sizes = [1, 128], strides = [1, 1]} : vector<10x128xf32> to vector<1x128xf32>
    %65 = vector.broadcast %63 : vector<10x1xf32> to vector<10x128xf32>
    %66 = vector.broadcast %64 : vector<1x128xf32> to vector<10x128xf32>
    %67 = arith.mulf %65, %66 : vector<10x128xf32>
    %68 = arith.addf %62, %67 : vector<10x128xf32>
    %c16_17 = arith.constant 16 : index
    %c7 = arith.constant 7 : index
    %69 = vector.load %arg1[%c16_17, %c7] : memref<40x16xf32, #tpu.memory_space<vmem>>, vector<10x1xf32>
    %70 = vector.extract_strided_slice %23 {offsets = [7, 0], sizes = [1, 128], strides = [1, 1]} : vector<10x128xf32> to vector<1x128xf32>
    %71 = vector.broadcast %69 : vector<10x1xf32> to vector<10x128xf32>
    %72 = vector.broadcast %70 : vector<1x128xf32> to vector<10x128xf32>
    %73 = arith.mulf %71, %72 : vector<10x128xf32>
    %74 = arith.addf %68, %73 : vector<10x128xf32>
    %c16_18 = arith.constant 16 : index
    %c8 = arith.constant 8 : index
    %75 = vector.load %arg1[%c16_18, %c8] : memref<40x16xf32, #tpu.memory_space<vmem>>, vector<10x1xf32>
    %76 = vector.extract_strided_slice %23 {offsets = [8, 0], sizes = [1, 128], strides = [1, 1]} : vector<10x128xf32> to vector<1x128xf32>
    %77 = vector.broadcast %75 : vector<10x1xf32> to vector<10x128xf32>
    %78 = vector.broadcast %76 : vector<1x128xf32> to vector<10x128xf32>
    %79 = arith.mulf %77, %78 : vector<10x128xf32>
    %80 = arith.addf %74, %79 : vector<10x128xf32>
    %c16_19 = arith.constant 16 : index
    %c9 = arith.constant 9 : index
    %81 = vector.load %arg1[%c16_19, %c9] : memref<40x16xf32, #tpu.memory_space<vmem>>, vector<10x1xf32>
    %82 = vector.extract_strided_slice %23 {offsets = [9, 0], sizes = [1, 128], strides = [1, 1]} : vector<10x128xf32> to vector<1x128xf32>
    %83 = vector.broadcast %81 : vector<10x1xf32> to vector<10x128xf32>
    %84 = vector.broadcast %82 : vector<1x128xf32> to vector<10x128xf32>
    %85 = arith.mulf %83, %84 : vector<10x128xf32>
    %86 = arith.addf %80, %85 : vector<10x128xf32>
    %cst_20 = arith.constant 0.000000e+00 : f32
    %87 = vector.broadcast %cst_20 : f32 to vector<10x128xf32>
    %88 = arith.maximumf %86, %87 : vector<10x128xf32>
    %c32 = arith.constant 32 : index
    %c10_21 = arith.constant 10 : index
    %89 = vector.load %arg1[%c32, %c10_21] : memref<40x16xf32, #tpu.memory_space<vmem>>, vector<3x1xf32>
    %90 = vector.shape_cast %89 : vector<3x1xf32> to vector<3x1xf32>
    %91 = vector.broadcast %90 : vector<3x1xf32> to vector<3x128xf32>
    %c32_22 = arith.constant 32 : index
    %c0_23 = arith.constant 0 : index
    %92 = vector.load %arg1[%c32_22, %c0_23] : memref<40x16xf32, #tpu.memory_space<vmem>>, vector<3x1xf32>
    %93 = vector.extract_strided_slice %88 {offsets = [0, 0], sizes = [1, 128], strides = [1, 1]} : vector<10x128xf32> to vector<1x128xf32>
    %94 = vector.broadcast %92 : vector<3x1xf32> to vector<3x128xf32>
    %95 = vector.broadcast %93 : vector<1x128xf32> to vector<3x128xf32>
    %96 = arith.mulf %94, %95 : vector<3x128xf32>
    %97 = arith.addf %91, %96 : vector<3x128xf32>
    %c32_24 = arith.constant 32 : index
    %c1_25 = arith.constant 1 : index
    %98 = vector.load %arg1[%c32_24, %c1_25] : memref<40x16xf32, #tpu.memory_space<vmem>>, vector<3x1xf32>
    %99 = vector.extract_strided_slice %88 {offsets = [1, 0], sizes = [1, 128], strides = [1, 1]} : vector<10x128xf32> to vector<1x128xf32>
    %100 = vector.broadcast %98 : vector<3x1xf32> to vector<3x128xf32>
    %101 = vector.broadcast %99 : vector<1x128xf32> to vector<3x128xf32>
    %102 = arith.mulf %100, %101 : vector<3x128xf32>
    %103 = arith.addf %97, %102 : vector<3x128xf32>
    %c32_26 = arith.constant 32 : index
    %c2_27 = arith.constant 2 : index
    %104 = vector.load %arg1[%c32_26, %c2_27] : memref<40x16xf32, #tpu.memory_space<vmem>>, vector<3x1xf32>
    %105 = vector.extract_strided_slice %88 {offsets = [2, 0], sizes = [1, 128], strides = [1, 1]} : vector<10x128xf32> to vector<1x128xf32>
    %106 = vector.broadcast %104 : vector<3x1xf32> to vector<3x128xf32>
    %107 = vector.broadcast %105 : vector<1x128xf32> to vector<3x128xf32>
    %108 = arith.mulf %106, %107 : vector<3x128xf32>
    %109 = arith.addf %103, %108 : vector<3x128xf32>
    %c32_28 = arith.constant 32 : index
    %c3_29 = arith.constant 3 : index
    %110 = vector.load %arg1[%c32_28, %c3_29] : memref<40x16xf32, #tpu.memory_space<vmem>>, vector<3x1xf32>
    %111 = vector.extract_strided_slice %88 {offsets = [3, 0], sizes = [1, 128], strides = [1, 1]} : vector<10x128xf32> to vector<1x128xf32>
    %112 = vector.broadcast %110 : vector<3x1xf32> to vector<3x128xf32>
    %113 = vector.broadcast %111 : vector<1x128xf32> to vector<3x128xf32>
    %114 = arith.mulf %112, %113 : vector<3x128xf32>
    %115 = arith.addf %109, %114 : vector<3x128xf32>
    %c32_30 = arith.constant 32 : index
    %c4_31 = arith.constant 4 : index
    %116 = vector.load %arg1[%c32_30, %c4_31] : memref<40x16xf32, #tpu.memory_space<vmem>>, vector<3x1xf32>
    %117 = vector.extract_strided_slice %88 {offsets = [4, 0], sizes = [1, 128], strides = [1, 1]} : vector<10x128xf32> to vector<1x128xf32>
    %118 = vector.broadcast %116 : vector<3x1xf32> to vector<3x128xf32>
    %119 = vector.broadcast %117 : vector<1x128xf32> to vector<3x128xf32>
    %120 = arith.mulf %118, %119 : vector<3x128xf32>
    %121 = arith.addf %115, %120 : vector<3x128xf32>
    %c32_32 = arith.constant 32 : index
    %c5_33 = arith.constant 5 : index
    %122 = vector.load %arg1[%c32_32, %c5_33] : memref<40x16xf32, #tpu.memory_space<vmem>>, vector<3x1xf32>
    %123 = vector.extract_strided_slice %88 {offsets = [5, 0], sizes = [1, 128], strides = [1, 1]} : vector<10x128xf32> to vector<1x128xf32>
    %124 = vector.broadcast %122 : vector<3x1xf32> to vector<3x128xf32>
    %125 = vector.broadcast %123 : vector<1x128xf32> to vector<3x128xf32>
    %126 = arith.mulf %124, %125 : vector<3x128xf32>
    %127 = arith.addf %121, %126 : vector<3x128xf32>
    %c32_34 = arith.constant 32 : index
    %c6_35 = arith.constant 6 : index
    %128 = vector.load %arg1[%c32_34, %c6_35] : memref<40x16xf32, #tpu.memory_space<vmem>>, vector<3x1xf32>
    %129 = vector.extract_strided_slice %88 {offsets = [6, 0], sizes = [1, 128], strides = [1, 1]} : vector<10x128xf32> to vector<1x128xf32>
    %130 = vector.broadcast %128 : vector<3x1xf32> to vector<3x128xf32>
    %131 = vector.broadcast %129 : vector<1x128xf32> to vector<3x128xf32>
    %132 = arith.mulf %130, %131 : vector<3x128xf32>
    %133 = arith.addf %127, %132 : vector<3x128xf32>
    %c32_36 = arith.constant 32 : index
    %c7_37 = arith.constant 7 : index
    %134 = vector.load %arg1[%c32_36, %c7_37] : memref<40x16xf32, #tpu.memory_space<vmem>>, vector<3x1xf32>
    %135 = vector.extract_strided_slice %88 {offsets = [7, 0], sizes = [1, 128], strides = [1, 1]} : vector<10x128xf32> to vector<1x128xf32>
    %136 = vector.broadcast %134 : vector<3x1xf32> to vector<3x128xf32>
    %137 = vector.broadcast %135 : vector<1x128xf32> to vector<3x128xf32>
    %138 = arith.mulf %136, %137 : vector<3x128xf32>
    %139 = arith.addf %133, %138 : vector<3x128xf32>
    %c32_38 = arith.constant 32 : index
    %c8_39 = arith.constant 8 : index
    %140 = vector.load %arg1[%c32_38, %c8_39] : memref<40x16xf32, #tpu.memory_space<vmem>>, vector<3x1xf32>
    %141 = vector.extract_strided_slice %88 {offsets = [8, 0], sizes = [1, 128], strides = [1, 1]} : vector<10x128xf32> to vector<1x128xf32>
    %142 = vector.broadcast %140 : vector<3x1xf32> to vector<3x128xf32>
    %143 = vector.broadcast %141 : vector<1x128xf32> to vector<3x128xf32>
    %144 = arith.mulf %142, %143 : vector<3x128xf32>
    %145 = arith.addf %139, %144 : vector<3x128xf32>
    %c32_40 = arith.constant 32 : index
    %c9_41 = arith.constant 9 : index
    %146 = vector.load %arg1[%c32_40, %c9_41] : memref<40x16xf32, #tpu.memory_space<vmem>>, vector<3x1xf32>
    %147 = vector.extract_strided_slice %88 {offsets = [9, 0], sizes = [1, 128], strides = [1, 1]} : vector<10x128xf32> to vector<1x128xf32>
    %148 = vector.broadcast %146 : vector<3x1xf32> to vector<3x128xf32>
    %149 = vector.broadcast %147 : vector<1x128xf32> to vector<3x128xf32>
    %150 = arith.mulf %148, %149 : vector<3x128xf32>
    %151 = arith.addf %145, %150 : vector<3x128xf32>
    %c0_42 = arith.constant 0 : index
    %c0_43 = arith.constant 0 : index
    %152 = vector.load %arg3[%c0_42, %c0_43] : memref<3x128xf32, #tpu.memory_space<vmem>>, vector<3x128xf32>
    tpu.vector_store %arg3[%c0_42, %c0_43], %151 {strides = array<i32>} : memref<3x128xf32, #tpu.memory_space<vmem>>, vector<3x128xf32>,
    return
  }
  func.func @transform_0(%arg0: i32) -> (i32, i32) {
    %c0_i32 = arith.constant 0 : i32
    %c0_i32_0 = arith.constant 0 : i32
    %c0_i32_1 = arith.constant 0 : i32
    return %c0_i32, %c0_i32_0 : i32, i32
  }
  func.func @transform_1(%arg0: i32) -> (i32, i32) {
    %c0_i32 = arith.constant 0 : i32
    %c0_i32_0 = arith.constant 0 : i32
    return %c0_i32, %arg0 : i32, i32
  }
  func.func @transform_2(%arg0: i32) -> (i32, i32) {
    %c0_i32 = arith.constant 0 : i32
    %c0_i32_0 = arith.constant 0 : i32
    return %c0_i32, %arg0 : i32, i32
  }
}

</mosaic_0001>

<bundles_post_ra>
// kernel: tpu_custom_call.1
= control target key start
LH: loop header
LB: loop body
LE: loop exit
PB: predicated region body
PF: predicated region fallthrough
CT: control target
= control target key end

     0   :  { %v440_v1 = vmov 0   ;;  %v441_v2 = vmov 3   ;;  %s555_s0 = inlined_call_operand.vmem [shape: f32[40,16], index: 0, kind: input, shape index: {}]   ;;  %s556_s1 = inlined_call_operand.vmem [shape: f32[3,128], index: 1, kind: input, shape index: {}]   ;;  %s557_s2 = inlined_call_operand.hbm [shape: f32[3,128], index: 2, kind: output, shape index: {}]  }
   0x1   :  { %v13_v0 = vld [vmem:[%s555_s0] sm:$0xff]  ;;  %383 = vset.pattern.permute.xlu1 %v440_v1  ;;  %382 = vset.pattern.permute.xlu0 %v441_v2  ;;  %v14_v3 = vld [vmem:[%s555_s0 + $0x8] sm:$0x3] }
   0x2   :  { %26 = vperm.xlu1 %383, %v13_v0   ;;  %17 = vperm.xlu0 %382, %v13_v0  }
   0x3   :  { %7 = vsyncpa [#allocation3], 0  ;;  %v442_v4 = vmov 1   ;;  %v443_v5 = vmov 2   ;;  %v75_v6 = vld [vmem:[%s555_s0 + $0x10] sm:$0xff]  ;;  %v444_v7 = vmov 10   ;;  %v33_v23 = vlaneseq }
   0x4   :  { %v76_v8 = vld [vmem:[%s555_s0 + $0x18] sm:$0x3]  ;;  %v445_v9 = vmov 4   ;;  %v446_v10 = vmov 7   ;;  %v447_v11 = vmov 5   ;;  %v448_v13 = vmov 6  }
   0x5   :  { %v249_v12 = vld [vmem:[%s555_s0 + $0x20] sm:$0x7]  ;;  %v449_v14 = vmov 9   ;;  %v450_v15 = vmov 8   ;;  %v496_v26 = vshrl.u32 %v33_v23, 7 }
   0x6   :  { %30 = vperm.xlu1 %383, %v14_v3   ;;  %22 = vperm.xlu0 %382, %v14_v3   ;;  %v12_v29 = vld [vmem:[%s556_s1] sm:$0x7]  ;;  %s451_s1 = smov [#allocation2]  }
   0x7   :  { %v501_v28 = vsub.s32 0, %v496_v26  ;;  %v508_v33 = vsub.s32 1, %v496_v26  ;;  %v512_v38 = vsub.s32 2, %v496_v26  ;;  %v145_v53 = vsub.s32 3, %v496_v26  ;;  %s362_s20 = sshll.u32 %s451_s1, 4  ;;  %s363_s20 = int_to_ptr.vmem [resolvable:$true] %s362_s20 }
   0x8   :  { %v161_v57 = vsub.s32 4, %v496_v26  ;;  %s418_s21 = scalar_lea.vmem %s363_s20, 64  ;;  %p423_p1 = scmp.lt.s32.totalorder %s363_s20, %s363_s20 }
   0x9   :  { %v36_v32 = vrot.slane %v12_v29, %v501_v28  ;;  %v52_v36 = vrot.slane %v12_v29, %v508_v33  ;;  %v68_v42 = vrot.slane %v12_v29, %v512_v38  ;;  %p419_p0 = scmp.ne.s32.totalorder %s363_s20, %s418_s21  ;;  %p424_p2 = scmp.lt.s32.totalorder %s418_s21, %s418_s21 }
   0xa   :  { %384 = vset.pattern.permute.xlu1 %v442_v4  ;;  %386 = vset.pattern.permute.xlu0 %v443_v5 }
   0xb   :  { %46 = vperm.xlu1 %384, %v14_v3   ;;  %62 = vperm.xlu0 %386, %v14_v3   ;;  %p425_p3 = por %p424_p2, %p423_p1 }
   0xd   :  { %p426_p4 = pnand %p425_p3, %p419_p0 }
   0xf   :  { %385 = vset.pattern.permute.xlu1 %v443_v5  ;;  %388 = vset.pattern.permute.xlu0 %v440_v1 }
  0x10   :  { %58 = vperm.xlu1 %385, %v13_v0   ;;  %88 = vperm.xlu0 %388, %v75_v6  }
  0x14   :  { %387 = vset.pattern.permute.xlu1 %v444_v7  ;;  %389 = vset.pattern.permute.xlu0 %v442_v4 }
  0x15   :  { %79 = vperm.xlu1 %387, %v75_v6   ;;  %42 = vperm.xlu0 %389, %v13_v0  }
  0x19   :  { %84 = vperm.xlu1 %387, %v76_v8   ;;  %108 = vperm.xlu0 %389, %v76_v8  }
  0x1d   :  { %390 = vset.pattern.permute.xlu1 %v440_v1  ;;  %394 = vset.pattern.permute.xlu0 %v445_v9 }
  0x1e   :  { %92 = vperm.xlu1 %390, %v76_v8   ;;  %152 = vperm.xlu0 %394, %v75_v6  }
  0x22   :  { %391 = vset.pattern.permute.xlu1 %v442_v4  ;;  %397 = vset.pattern.permute.xlu0 %v446_v10 }
  0x23   :  { %104 = vperm.xlu1 %391, %v75_v6   ;;  %200 = vperm.xlu0 %397, %v75_v6  }
  0x27   :  { %392 = vset.pattern.permute.xlu1 %v443_v5  ;;  %402 = vset.pattern.permute.xlu0 %v447_v11 }
  0x28   :  { %120 = vperm.xlu1 %392, %v75_v6   ;;  %172 = vperm.xlu0 %402, %v76_v8  }
  0x2c   :  { %393 = vset.pattern.permute.xlu1 %v441_v2  ;;  %405 = vset.pattern.permute.xlu0 %v444_v7 }
  0x2d   :  { %136 = vperm.xlu1 %393, %v75_v6   ;;  %252 = vperm.xlu0 %405, %v249_v12  }
  0x31   :  { %395 = vset.pattern.permute.xlu1 %v447_v11  ;;  %406 = vset.pattern.permute.xlu0 %v443_v5 }
  0x32   :  { %168 = vperm.xlu1 %395, %v75_v6   ;;  %124 = vperm.xlu0 %406, %v76_v8  }
  0x36   :  { %396 = vset.pattern.permute.xlu1 %v448_v13  ;;  %276 = vperm.xlu0 %406, %v249_v12  }
  0x37   :  { %184 = vperm.xlu1 %396, %v75_v6  }
  0x3a   :  { %411 = vset.pattern.permute.xlu0 %v449_v14 }
  0x3b   :  { %398 = vset.pattern.permute.xlu1 %v450_v15  ;;  %236 = vperm.xlu0 %411, %v76_v8  }
  0x3c   :  { %216 = vperm.xlu1 %398, %v75_v6  }
  0x3f   :  { %414 = vset.pattern.permute.xlu0 %v448_v13 }
  0x40   :  { %399 = vset.pattern.permute.xlu1 %v449_v14  ;;  %316 = vperm.xlu0 %414, %v249_v12  }
  0x41   :  { %232 = vperm.xlu1 %399, %v75_v6   ;;  %v177_v6 = vsub.s32 5, %v496_v26 }
  0x44   :  { %417 = vset.pattern.permute.xlu0 %v449_v14 }
  0x45   :  { %400 = vset.pattern.permute.xlu1 %v441_v2  ;;  %346 = vperm.xlu0 %417, %v249_v12  }
  0x46   :  { %140 = vperm.xlu1 %400, %v76_v8  }
  0x4a   :  { %401 = vset.pattern.permute.xlu1 %v445_v9 }
  0x4b   :  { %156 = vperm.xlu1 %401, %v76_v8  }
  0x4f   :  { %403 = vset.pattern.permute.xlu1 %v440_v1 }
  0x50   :  { %256 = vperm.xlu1 %403, %v249_v12  }
  0x54   :  { %404 = vset.pattern.permute.xlu1 %v448_v13 }
  0x55   :  { %188 = vperm.xlu1 %404, %v76_v8  }
  0x59   :  { %407 = vset.pattern.permute.xlu1 %v442_v4 }
  0x5a   :  { %266 = vperm.xlu1 %407, %v249_v12  }
  0x5e   :  { %408 = vset.pattern.permute.xlu1 %v446_v10 }
  0x5f   :  { %204 = vperm.xlu1 %408, %v76_v8  }
  0x63   :  { %409 = vset.pattern.permute.xlu1 %v450_v15 }
  0x64   :  { %220 = vperm.xlu1 %409, %v76_v8  }
  0x68   :  { %410 = vset.pattern.permute.xlu1 %v441_v2 }
  0x69   :  { %286 = vperm.xlu1 %410, %v249_v12  }
  0x6d   :  { %412 = vset.pattern.permute.xlu1 %v445_v9 }
  0x6e   :  { %296 = vperm.xlu1 %412, %v249_v12  }
  0x72   :  { %413 = vset.pattern.permute.xlu1 %v447_v11  ;;  %v193_v11 = vsub.s32 6, %v496_v26 }
  0x73   :  { %306 = vperm.xlu1 %413, %v249_v12  }
  0x77   :  { %415 = vset.pattern.permute.xlu1 %v446_v10 }
  0x78   :  { %326 = vperm.xlu1 %415, %v249_v12  }
  0x7c   :  { %416 = vset.pattern.permute.xlu1 %v450_v15 }
  0x7d   :  { %336 = vperm.xlu1 %416, %v249_v12   ;;  %v27_v16 = vpop.permute.xlu1 %26  ;;  %v18_v19 = vpop.permute.xlu0 %17 }
  0x7e   :  { %v37_v35 = vmul.f32 %v36_v32, %v27_v16 }
  0x80   :  { %v39_v40 = vadd.f32 %v37_v35, %v18_v19 }
  0x81   :  { %v31_v17 = vpop.permute.xlu1 %30  ;;  %v23_v21 = vpop.permute.xlu0 %22 }
  0x82   :  { %v38_v59 = vmul.f32 %v36_v32, %v31_v17 }
  0x84   :  { %v40_v3 = vadd.f32 %v38_v59, %v23_v21 }
  0x86   :  { %v47_v18 = vpop.permute.xlu1 %46  ;;  %v63_v25 = vpop.permute.xlu0 %62 }
  0x87   :  { %v54_v63 = vmul.f32 %v52_v36, %v47_v18  ;;  %v70_v9 = vmul.f32 %v68_v42, %v63_v25 }
  0x89   :  { %v56_v8 = vadd.f32 %v54_v63, %v40_v3 }
  0x8b   :  { %v59_v20 = vpop.permute.xlu1 %58  ;;  %v89_v30 = vpop.permute.xlu0 %88  ;;  %v72_v16 = vadd.f32 %v70_v9, %v56_v8 }
  0x8c   :  { %v69_v44 = vmul.f32 %v68_v42, %v59_v20  ;;  %v209_v20 = vsub.s32 7, %v496_v26 }
  0x90   :  { %v80_v22 = vpop.permute.xlu1 %79  ;;  %v43_v34 = vpop.permute.xlu0 %42 }
  0x91   :  { %v53_v39 = vmul.f32 %v52_v36, %v43_v34 }
  0x93   :  { %v55_v43 = vadd.f32 %v53_v39, %v39_v40 }
  0x94   :  { %v494_v24 = vpop.permute.xlu1 %84  ;;  %v109_v54 = vpop.permute.xlu0 %108 }
  0x95   :  { %v71_v45 = vadd.f32 %v69_v44, %v55_v43 }
  0x97   :  { %v73_v47 = vmax.f32 %v71_v45, 0.0 }
  0x99   :  { %v498_v27 = vpop.permute.xlu1 %92  ;;  %v98_v49 = vrot.slane %v73_v47, %v501_v28  ;;  %v114_v51 = vrot.slane %v73_v47, %v508_v33  ;;  %v130_v56 = vrot.slane %v73_v47, %v512_v38  ;;  %v146_v62 = vrot.slane %v73_v47, %v145_v53  ;;  %v153_v2 = vpop.permute.xlu0 %152 }
  0x9a   :  { %v162_v4 = vrot.slane %v73_v47, %v161_v57  ;;  %v178_v13 = vrot.slane %v73_v47, %v177_v6  ;;  %v194_v19 = vrot.slane %v73_v47, %v193_v11 }
  0x9b   :  { %v99_v52 = vmul.f32 %v98_v49, %v89_v30  ;;  %v210_v30 = vrot.slane %v73_v47, %v209_v20  ;;  %v116_v47 = vmul.f32 %v114_v51, %v109_v54 }
  0x9c   :  { %v163_v12 = vmul.f32 %v162_v4, %v153_v2 }
  0x9d   :  { %v101_v60 = vadd.f32 %v99_v52, %v80_v22  ;;  %v74_v22 = vmax.f32 %v72_v16, 0.0 }
  0x9e   :  { %v105_v31 = vpop.permute.xlu1 %104  ;;  %v201_v14 = vpop.permute.xlu0 %200 }
  0x9f   :  { %v115_v55 = vmul.f32 %v114_v51, %v105_v31  ;;  %v211_v32 = vmul.f32 %v210_v30, %v201_v14  ;;  %v226_v34 = vrot.slane %v74_v22, %v501_v28 }
  0xa1   :  { %v117_v0 = vadd.f32 %v115_v55, %v101_v60 }
  0xa3   :  { %v121_v37 = vpop.permute.xlu1 %120  ;;  %v173_v29 = vpop.permute.xlu0 %172 }
  0xa4   :  { %v131_v61 = vmul.f32 %v130_v56, %v121_v37  ;;  %v242_v37 = vrot.slane %v74_v22, %v508_v33  ;;  %v180_v3 = vmul.f32 %v178_v13, %v173_v29 }
  0xa6   :  { %v133_v5 = vadd.f32 %v131_v61, %v117_v0 }
  0xa8   :  { %v137_v41 = vpop.permute.xlu1 %136  ;;  %v253_v35 = vpop.permute.xlu0 %252 }
  0xa9   :  { %v147_v1 = vmul.f32 %v146_v62, %v137_v41  ;;  %v100_v41 = vmul.f32 %v98_v49, %v498_v27 }
  0xab   :  { %v149_v10 = vadd.f32 %v147_v1, %v133_v5 }
  0xad   :  { %v169_v46 = vpop.permute.xlu1 %168  ;;  %v165_v17 = vadd.f32 %v163_v12, %v149_v10  ;;  %v125_v45 = vpop.permute.xlu0 %124 }
  0xae   :  { %v179_v18 = vmul.f32 %v178_v13, %v169_v46  ;;  %v102_v46 = vadd.f32 %v100_v41, %v494_v24  ;;  %v132_v52 = vmul.f32 %v130_v56, %v125_v45 }
  0xb0   :  { %v181_v23 = vadd.f32 %v179_v18, %v165_v17  ;;  %v118_v59 = vadd.f32 %v116_v47, %v102_v46 }
  0xb1   :  { %v277_v8 = vpop.permute.xlu0 %276 }
  0xb2   :  { %v185_v48 = vpop.permute.xlu1 %184  ;;  %v134_v63 = vadd.f32 %v132_v52, %v118_v59 }
  0xb3   :  { %v195_v21 = vmul.f32 %v194_v19, %v185_v48 }
  0xb5   :  { %v197_v31 = vadd.f32 %v195_v21, %v181_v23 }
  0xb6   :  { %v237_v18 = vpop.permute.xlu0 %236 }
  0xb7   :  { %v217_v50 = vpop.permute.xlu1 %216  ;;  %v213_v39 = vadd.f32 %v211_v32, %v197_v31  ;;  %v244_v23 = vmul.f32 %v242_v37, %v237_v18 }
  0xb8   :  { %v227_v40 = vmul.f32 %v226_v34, %v217_v50 }
  0xba   :  { %v229_v43 = vadd.f32 %v227_v40, %v213_v39 }
  0xbc   :  { %v233_v58 = vpop.permute.xlu1 %232 }
  0xbd   :  { %v243_v42 = vmul.f32 %v242_v37, %v233_v58 }
  0xbf   :  { %v245_v48 = vadd.f32 %v243_v42, %v229_v43 }
  0xc1   :  { %v141_v7 = vpop.permute.xlu1 %140  ;;  %v247_v60 = vmax.f32 %v245_v48, 0.0 }
  0xc2   :  { %v148_v61 = vmul.f32 %v146_v62, %v141_v7 }
  0xc3   :  { %v262_v50 = vrot.slane %v247_v60, %v501_v28  ;;  %v272_v58 = vrot.slane %v247_v60, %v508_v33  ;;  %v282_v62 = vrot.slane %v247_v60, %v512_v38  ;;  %v292_v12 = vrot.slane %v247_v60, %v145_v53 }
  0xc4   :  { %v150_v1 = vadd.f32 %v148_v61, %v134_v63  ;;  %v302_v13 = vrot.slane %v247_v60, %v161_v57  ;;  %v312_v38 = vrot.slane %v247_v60, %v177_v6  ;;  %v322_v53 = vrot.slane %v247_v60, %v193_v11 }
  0xc5   :  { %v332_v40 = vrot.slane %v247_v60, %v209_v20 }
  0xc6   :  { %v157_v15 = vpop.permute.xlu1 %156 }
  0xc7   :  { %v164_v0 = vmul.f32 %v162_v4, %v157_v15  ;;  %v283_v15 = vmul.f32 %v282_v62, %v277_v8 }
  0xc9   :  { %v166_v27 = vadd.f32 %v164_v0, %v150_v1 }
  0xcb   :  { %v257_v25 = vpop.permute.xlu1 %256  ;;  %v182_v56 = vadd.f32 %v180_v3, %v166_v27 }
  0xcc   :  { %v263_v49 = vmul.f32 %v262_v50, %v257_v25 }
  0xce   :  { %v264_v54 = vadd.f32 %v263_v49, %v253_v35 }
  0xd0   :  { %v189_v36 = vpop.permute.xlu1 %188 }
  0xd1   :  { %v196_v5 = vmul.f32 %v194_v19, %v189_v36 }
  0xd3   :  { %v198_v7 = vadd.f32 %v196_v5, %v182_v56 }
  0xd5   :  { %v267_v44 = vpop.permute.xlu1 %266 }
  0xd6   :  { %v273_v24 = vmul.f32 %v272_v58, %v267_v44 }
  0xd8   :  { %v274_v4 = vadd.f32 %v273_v24, %v264_v54 }
  0xda   :  { %v205_v55 = vpop.permute.xlu1 %204  ;;  %v284_v21 = vadd.f32 %v283_v15, %v274_v4 }
  0xdb   :  { %v212_v9 = vmul.f32 %v210_v30, %v205_v55 }
  0xdd   :  { %v214_v14 = vadd.f32 %v212_v9, %v198_v7 }
  0xdf   :  { %v221_v2 = vpop.permute.xlu1 %220 }
  0xe0   :  { %v228_v10 = vmul.f32 %v226_v34, %v221_v2  ;;  %v317_v34 = vpop.permute.xlu0 %316 }
  0xe1   :  { %v323_v36 = vmul.f32 %v322_v53, %v317_v34 }
  0xe2   :  { %v230_v19 = vadd.f32 %v228_v10, %v214_v14 }
  0xe4   :  { %v287_v51 = vpop.permute.xlu1 %286  ;;  %v246_v30 = vadd.f32 %v244_v23, %v230_v19  ;;  %v347_v43 = vpop.permute.xlu0 %346 }
  0xe5   :  { %v293_v16 = vmul.f32 %v292_v12, %v287_v51 }
  0xe6   :  { %v248_v57 = vmax.f32 %v246_v30, 0.0 }
  0xe7   :  { %v294_v25 = vadd.f32 %v293_v16, %v284_v21 }
  0xe8   :  { %v352_v42 = vrot.slane %v248_v57, %v508_v33  ;;  %v342_v6 = vrot.slane %v248_v57, %v501_v28 }
  0xe9   :  { %v297_v17 = vpop.permute.xlu1 %296 }
  0xea   :  { %v303_v22 = vmul.f32 %v302_v13, %v297_v17  ;;  %v353_v46 = vmul.f32 %v352_v42, %v347_v43 }
  0xec   :  { %v304_v31 = vadd.f32 %v303_v22, %v294_v25 }
  0xee   :  { %v307_v29 = vpop.permute.xlu1 %306 }
  0xef   :  { %v313_v32 = vmul.f32 %v312_v38, %v307_v29 }
  0xf1   :  { %v314_v35 = vadd.f32 %v313_v32, %v304_v31 }
  0xf3   :  { %v327_v39 = vpop.permute.xlu1 %326  ;;  %v324_v37 = vadd.f32 %v323_v36, %v314_v35 }
  0xf4   :  { %v333_v41 = vmul.f32 %v332_v40, %v327_v39 }
  0xf6   :  { %v334_v11 = vadd.f32 %v333_v41, %v324_v37 }
  0xf8   :  { %v337_v44 = vpop.permute.xlu1 %336 }
  0xf9   :  { %v343_v45 = vmul.f32 %v342_v6, %v337_v44 }
  0xfb   :  { %v344_v48 = vadd.f32 %v343_v45, %v334_v11 }
  0xfd   :  { %v354_v47 = vadd.f32 %v353_v46, %v344_v48 }
  0xff   :  { %355 = vst [vmem:[#allocation2] sm:$0x7] %v354_v47 }
 0x100   :  { %429 = shalt.err (!%p426_p4)
}
 0x101   :  { %365 = dma.vmem_to_hbm [thread:$0]  %s363_s20, 64, %s557_s2, [#allocation3]  }
 0x102   :  { %438 = dma.done.wait [#allocation3], 64  }
 0x103   :  { %439 = vsyncadd [#allocation3], 4294967232 }
 0x104   :  { %369 = vsyncpa [#allocation3], 1 }

</bundles_post_ra>
